<compile_context>
chip_gen: v7x
topology: tpu7x:2x2x1
jax: 0.10.0
libtpu: 0.0.40
codegen_flags: <defaults>
</compile_context>

<pallas_src>
import jax
import jax.numpy as jnp
from jax.experimental import pallas as pl
from jax.experimental.pallas import tpu as pltpu

_LANES = 128                            # vreg lane width (output minor dim)
_TARGET_BLOCK_BYTES = 2 * 1024 * 1024   # ~2 MiB per block buffer (any dtype)
_MIN_PARALLEL_BLOCK_BYTES = 512 * 1024  # only split for megacore if quarters >= 512 KiB
# Sublane granularity per itemsize so blocks are whole native tiles:
# f32 -> (8,128), bf16/f16 -> (16,128), int8/fp8 -> (32,128).
_SUBLANES = {4: 8, 2: 16, 1: 32}


# ----------------------------- Pallas kernel ------------------------------ #

def _copy_kernel(x_ref, o_ref):
    # Whole-tile, lane-dense load/store: full unmasked vst per vreg.
    o_ref[...] = x_ref[...]


# ------------------------------- Wrappers ---------------------------------- #

def _tiled_copy_2d(x2, sub):
    """Copy a (rows, 128) array block-by-block; `rows` is a multiple of `sub`."""
    rows, lanes = x2.shape
    itemsize = x2.dtype.itemsize

    # Dtype-aware block sizing: ~2 MiB per block buffer.
    block_rows = max(sub, (_TARGET_BLOCK_BYTES // (lanes * itemsize)) // sub * sub)

    # v7x megacore: for large inputs guarantee >= 4 blocks so the "parallel"
    # grid axis actually shards across both TensorCores.
    total_bytes = rows * lanes * itemsize
    if total_bytes >= 4 * _MIN_PARALLEL_BLOCK_BYTES:
        quarter_rows = -(-rows // 4)
        quarter_rows = -(-quarter_rows // sub) * sub
        block_rows = min(block_rows, quarter_rows)

    block_rows = min(block_rows, rows)          # rows, block_rows: multiples of sub
    n_blocks = -(-rows // block_rows)           # partial last block handled by Pallas

    return pl.pallas_call(
        _copy_kernel,
        out_shape=jax.ShapeDtypeStruct((rows, lanes), x2.dtype),
        grid_spec=pltpu.PrefetchScalarGridSpec(
            num_scalar_prefetch=0,
            grid=(n_blocks,),
            in_specs=[pl.BlockSpec((block_rows, lanes), lambda i: (i, 0))],
            out_specs=pl.BlockSpec((block_rows, lanes), lambda i: (i, 0)),
        ),
        # Donate the input HBM buffer as the output: squeeze moves no data, so
        # when the caller's input is dead XLA can elide the extra allocation.
        input_output_aliases={0: 0},
        compiler_params=pltpu.CompilerParams(
            dimension_semantics=("parallel",)),
    )(x2)


def _lane_dense_copy(flat):
    """Copy a flat 1-D array through a lane-dense (rows, 128) Pallas kernel."""
    total = flat.shape[0]
    sub = _SUBLANES.get(flat.dtype.itemsize, 8)
    tile = sub * _LANES

    if total % tile == 0:
        # Fast path (common): zero wrapper-side pad / slice copies.
        out2 = _tiled_copy_2d(flat.reshape(total // _LANES, _LANES), sub)
        return out2.reshape(total)

    # Rare unaligned path: one pad + one slice around the copy.
    padded_total = -(-total // tile) * tile
    padded = jnp.pad(flat, (0, padded_total - total))
    out2 = _tiled_copy_2d(padded.reshape(padded_total // _LANES, _LANES), sub)
    return out2.reshape(padded_total)[:total]


def squeeze(x, dim=None):
    """Forward of the PyTorch `Squeeze` module: x.squeeze(dim).

    Matches torch semantics: removes dimension `dim` if it has size 1,
    otherwise returns the input unchanged.  dim=None squeezes all size-1 dims.
    """
    if dim is None:
        out_shape = tuple(s for s in x.shape if s != 1)
    else:
        d = dim if dim >= 0 else dim + x.ndim
        assert 0 <= d < x.ndim, f"dim {dim} out of range for rank {x.ndim}"
        if x.shape[d] != 1:
            out_shape = tuple(x.shape)           # torch: no-op if size != 1
        else:
            out_shape = tuple(x.shape[:d] + x.shape[d + 1:])

    # No-op / empty cases: squeeze is pure metadata -> skip the kernel entirely.
    if out_shape == tuple(x.shape):
        return x
    if x.size == 0:
        return x.reshape(out_shape)

    # Squeeze never reorders data in row-major layout, so a flat lane-dense
    # copy + reshape reproduces the op bit-for-bit.
    return _lane_dense_copy(x.reshape(-1)).reshape(out_shape)


# --------------------------------- Main ------------------------------------ #

if __name__ == "__main__":
    key = jax.random.PRNGKey(0)
    k0, k1 = jax.random.split(key)

    # Squeeze(dim=1): (2, 1, 4, 16, 16) -> (2, 4, 16, 16)   (128-aligned fast path)
    x = jax.random.normal(k0, (2, 1, 4, 16, 16), dtype=jnp.float32)
    out = jax.block_until_ready(squeeze(x, 1))
    ref = jnp.squeeze(x, axis=1)
    assert out.shape == ref.shape == (2, 4, 16, 16), out.shape
    assert jnp.array_equal(out, ref), float(jnp.max(jnp.abs(out - ref)))

    # Unaligned bf16 case exercising the fallback path: (3, 1, 5, 7) -> (3, 5, 7)
    xb = jax.random.normal(k1, (3, 1, 5, 7), dtype=jnp.bfloat16)
    outb = jax.block_until_ready(squeeze(xb, 1))
    refb = jnp.squeeze(xb, axis=1)
    assert outb.shape == refb.shape == (3, 5, 7), outb.shape
    assert jnp.array_equal(outb, refb)

    # No-op case (dim size != 1): input returned unchanged, no kernel launch.
    y = squeeze(x, 0)
    assert y is x and y.shape == x.shape

    print("KERNEL_OK")
</pallas_src>

<mosaic_0001>
module attributes {stable_mosaic.version = 11 : i64} {
  func.func @_copy_kernel(%arg0: i32, %arg1: memref<16x128xf32, #tpu.memory_space<vmem>>, %arg2: memref<16x128xf32, #tpu.memory_space<vmem>>) attributes {dimension_semantics = [#tpu.dimension_semantics<parallel>], iteration_bounds = array<i64: 1>, scalar_prefetch = 0 : i64, scratch_operands = 0 : i64, tpu.core_type = #tpu.core_type<tc>, window_params = [{transform_indices = @transform_0, window_bounds = array<i64: 16, 128>}, {transform_indices = @transform_1, window_bounds = array<i64: 16, 128>}]} {
    %c0 = arith.constant 0 : index
    %c0_0 = arith.constant 0 : index
    %0 = vector.load %arg1[%c0, %c0_0] : memref<16x128xf32, #tpu.memory_space<vmem>>, vector<16x128xf32>
    %c0_1 = arith.constant 0 : index
    %c0_2 = arith.constant 0 : index
    %1 = vector.load %arg2[%c0_1, %c0_2] : memref<16x128xf32, #tpu.memory_space<vmem>>, vector<16x128xf32>
    tpu.vector_store %arg2[%c0_1, %c0_2], %0 {strides = array<i32>} : memref<16x128xf32, #tpu.memory_space<vmem>>, vector<16x128xf32>,
    return
  }
  func.func @transform_0(%arg0: i32) -> (i32, i32) {
    %c0_i32 = arith.constant 0 : i32
    %c0_i32_0 = arith.constant 0 : i32
    return %arg0, %c0_i32 : i32, i32
  }
  func.func @transform_1(%arg0: i32) -> (i32, i32) {
    %c0_i32 = arith.constant 0 : i32
    %c0_i32_0 = arith.constant 0 : i32
    return %arg0, %c0_i32 : i32, i32
  }
}

</mosaic_0001>

<bundles_post_ra>
// kernel: tpu_custom_call.1
= control target key start
LH: loop header
LB: loop body
LE: loop exit
PB: predicated region body
PF: predicated region fallthrough
CT: control target
= control target key end

     0   :  { %6 = vsyncpa [#allocation3], 0  ;;  %s134_s0 = inlined_call_operand.hbm [shape: f32[16,128], index: 0, kind: input, shape index: {}, may-alias: {0,1}]   ;;  %s135_s1 = inlined_call_operand.hbm [shape: f32[16,128], index: 1, kind: output, shape index: {}, may-alias: {0,1}]  }
   0x1   :  { %7 = vsyncpa [#allocation4], 0  ;;  %s96_s6 = smov [#allocation2]   ;;  %s48_s10 = scalar_lea.hbm %s134_s0, 256 }
   0x2   :  { %s13_s7 = sshll.u32 %s96_s6, 4  ;;  %p49_p0 = scmp.ne.s32.totalorder %s134_s0, %s48_s10  ;;  %s14_s7 = int_to_ptr.vmem [resolvable:$true] %s13_s7 }
   0x3   :  { %p52_p1 = scmp.lt.u32.totalorder %s48_s10, %s134_s0 }
   0x5   :  { %p54_p2 = pnand %p52_p1, %p49_p0 }
   0x7   :  { %57 = shalt.err (!%p54_p2)
}
   0x8   :  { %s58_s15 = scalar_lea.vmem %s14_s7, 256  ;;  %p63_p4 = scmp.lt.s32.totalorder %s14_s7, %s14_s7 }
   0x9   :  { %p59_p3 = scmp.ne.s32.totalorder %s14_s7, %s58_s15  ;;  %p64_p5 = scmp.lt.s32.totalorder %s58_s15, %s58_s15 }
   0xb   :  { %p65_p6 = por %p64_p5, %p63_p4 }
   0xd   :  { %p66_p7 = pnand %p65_p6, %p59_p3 }
   0xf   :  { %69 = shalt.err (!%p66_p7)
}
  0x10   :  { %s97_s16 = smov 128   ;;  %s98_s17 = smov 8  }
  0x11   :  { %19 = dma.hbm_to_vmem [thread:$0]  %s134_s0, 256, %s14_s7, [#allocation3], %s97_s16, %s97_s16, %s98_s17  }
  0x12   :  { %92 = dma.done.wait [#allocation3], 256  }
  0x13   :  { %93 = vsyncadd [#allocation3], 4294967040  ;;  %s99_s20 = smov [#allocation5]   ;;  %v23_v0 = vld [vmem:[#allocation2] sm:$0xff]  ;;  %v24_v1 = vld [vmem:[#allocation2 + $0x8] sm:$0xff] }
  0x14   :  { %s32_s21 = sshll.u32 %s99_s20, 4  ;;  %25 = vst [vmem:[#allocation5] sm:$0xff] %v23_v0  ;;  %26 = vst [vmem:[#allocation5 + $0x8] sm:$0xff] %v24_v1  ;;  %s33_s21 = int_to_ptr.vmem [resolvable:$true] %s32_s21 }
  0x15   :  { %s70_s22 = scalar_lea.vmem %s33_s21, 256  ;;  %p75_p9 = scmp.lt.s32.totalorder %s33_s21, %s33_s21 }
  0x16   :  { %p71_p8 = scmp.ne.s32.totalorder %s33_s21, %s70_s22  ;;  %p76_p10 = scmp.lt.s32.totalorder %s70_s22, %s70_s22 }
  0x18   :  { %p77_p11 = por %p76_p10, %p75_p9 }
  0x1a   :  { %p78_p12 = pnand %p77_p11, %p71_p8 }
  0x1c   :  { %81 = shalt.err (!%p78_p12)
}
  0x1d   :  { %s82_s0 = scalar_lea.hbm %s135_s1, 256 }
  0x1e   :  { %p83_p13 = scmp.ne.s32.totalorder %s135_s1, %s82_s0  ;;  %p86_p0 = scmp.lt.u32.totalorder %s82_s0, %s135_s1 }
  0x20   :  { %p88_p1 = pnand %p86_p0, %p83_p13 }
  0x22   :  { %91 = shalt.err (!%p88_p1)
}
  0x23   :  { %38 = dma.vmem_to_hbm [thread:$0]  %s33_s21, 256, %s135_s1, [#allocation4], %s97_s16, %s97_s16, %s98_s17  }
  0x24   :  { %94 = dma.done.wait [#allocation4], 256  }
  0x25   :  { %95 = vsyncadd [#allocation4], 4294967040 }
  0x26   :  { %42 = vsyncpa [#allocation3], 1 }
  0x27   :  { %43 = vsyncpa [#allocation4], 1 }

</bundles_post_ra>
